<compile_context>
chip_gen: v7x
topology: tpu7x:2x2x1
jax: 0.10.0
libtpu: 0.0.40
codegen_flags: <defaults>
</compile_context>

<pallas_src>
import numpy as np
import jax
import jax.numpy as jnp
from jax import lax
from jax.experimental import pallas as pl
from jax.experimental.pallas import tpu as pltpu

# ----------------------------------------------------------------------------
# Model hyper-parameters (CouplingNNP defaults: dimer_aev=True, use_belonging=True,
# modified_aev=False, unsqueeze_output=False)
# ----------------------------------------------------------------------------
NUM_ELEMENTS = 4                       # ['H', 'C', 'N', 'O']
NUM_SPECIES = NUM_ELEMENTS * 2         # dimer_aev doubles the species count -> 8
RCR, ETAR = 5.2, 16.0
SHFR = jnp.linspace(0.9, RCR - (RCR - 0.9) / 16, 16, dtype=jnp.float32)
RCA, ETAA = 3.5, 8.0
SHFA = jnp.linspace(0.9, RCA - (RCA - 0.9) / 4, 4, dtype=jnp.float32)
ZETA = 32.0
SHFZ = jnp.linspace(np.pi / 8 / 2, np.pi - np.pi / 8 / 2, 8, dtype=jnp.float32)

HIDDEN_CHANNELS = [64, 32, 16]
APPROX_CHANNELS = 1
OUTPUT_CHANNELS = 1

RADIAL_LEN = NUM_SPECIES * SHFR.shape[0]                       # 8*16 = 128
NUM_PAIRS = NUM_SPECIES * (NUM_SPECIES + 1) // 2               # 36
ANGULAR_SUB = SHFA.shape[0] * SHFZ.shape[0]                    # 32
ANGULAR_LEN = NUM_PAIRS * ANGULAR_SUB                          # 1152
AEV_DIM = RADIAL_LEN + ANGULAR_LEN                             # 1280 (exact multiple of 128)
IN_DIM = AEV_DIM + APPROX_CHANNELS                             # 1281


def _triu_index_table(s):
    t = np.zeros((s, s), dtype=np.int32)
    idx = 0
    for a in range(s):
        for b in range(a, s):
            t[a, b] = idx
            t[b, a] = idx
            idx += 1
    return t


TRIU_TABLE = jnp.asarray(_triu_index_table(NUM_SPECIES))


# ----------------------------------------------------------------------------
# AEV computation (torchani AEVComputer semantics, dense all-pairs form, plain JAX)
# ----------------------------------------------------------------------------
def compute_aev(species, coords):
    """species: (N, A) int32 in [0, NUM_SPECIES) (or -1 = pad); coords: (N, A, 3) f32."""
    N, A = species.shape
    valid = species >= 0
    sp = jnp.where(valid, species, 0)

    vec = coords[:, None, :, :] - coords[:, :, None, :]        # vec[n,i,j] = r_j - r_i
    dist = jnp.sqrt(jnp.sum(vec * vec, axis=-1))               # (N, A, A)
    neq = ~jnp.eye(A, dtype=bool)
    pair_valid = valid[:, :, None] & valid[:, None, :] & neq[None]

    # ---- radial AEV: 0.25 * exp(-EtaR*(d - ShfR)^2) * fc(d), binned by neighbor species
    rmask = pair_valid & (dist <= RCR)
    fc_r = 0.5 * jnp.cos(jnp.pi * dist / RCR) + 0.5
    rterms = 0.25 * jnp.exp(-ETAR * (dist[..., None] - SHFR) ** 2) * fc_r[..., None]
    rterms = rterms * rmask[..., None]                         # (N, A, A, 16)
    sp_oh = jax.nn.one_hot(sp, NUM_SPECIES, dtype=coords.dtype) * valid[..., None]
    radial = jnp.einsum('nijr,njs->nisr', rterms, sp_oh)       # (N, A, S, 16)
    radial = radial.reshape(N, A, RADIAL_LEN)

    # ---- angular AEV: pairs of neighbors (j, k) within Rca, binned by species pair
    amask = pair_valid & (dist <= RCA)                         # (N, A, A) for (i, j)
    jk_mask = amask[:, :, :, None] & amask[:, :, None, :] & neq[None, None, :, :]

    dot = jnp.einsum('nijc,nikc->nijk', vec, vec)              # (N, A, A, A)
    d_ij = dist[:, :, :, None]
    d_ik = dist[:, :, None, :]
    cos_ang = dot / jnp.maximum(d_ij * d_ik, 1e-10)
    ang = jnp.arccos(0.95 * cos_ang)                           # torchani's 0.95 factor
    fc_a = 0.5 * jnp.cos(jnp.pi * dist / RCA) + 0.5
    fcjk = fc_a[:, :, :, None] * fc_a[:, :, None, :]

    base = jnp.maximum((1.0 + jnp.cos(ang[..., None] - SHFZ)) / 2.0, 0.0)
    f1 = base ** ZETA                                          # (N, A, A, A, ShfZ)
    f2 = jnp.exp(-ETAA * (((d_ij + d_ik) / 2.0)[..., None] - SHFA) ** 2)   # (N,A,A,A,ShfA)

    # torchani constant layout (..., EtaA, Zeta, ShfA, ShfZ) -> ShfA outer, ShfZ inner
    aterms = 2.0 * f1[..., None, :] * f2[..., :, None] * fcjk[..., None, None]
    aterms = aterms * jk_mask[..., None, None]
    aterms = aterms.reshape(N, A, A, A, ANGULAR_SUB)

    pair_idx = TRIU_TABLE[sp[:, :, None], sp[:, None, :]]      # (N, A, A)
    pair_oh = jax.nn.one_hot(pair_idx, NUM_PAIRS, dtype=coords.dtype)
    # 0.5: each unordered neighbor pair counted once (terms are j<->k symmetric)
    angular = 0.5 * jnp.einsum('nijkt,njkp->nipt', aterms, pair_oh)  # (N, A, 36, 32)
    angular = angular.reshape(N, A, ANGULAR_LEN)

    return jnp.concatenate([radial, angular], axis=-1)         # (N, A, 1280)


# ----------------------------------------------------------------------------
# Pallas kernel: batched element-network MLP + per-molecule sum over atoms
# ----------------------------------------------------------------------------
def _celu(v, alpha=0.1):
    # torch.nn.CELU(alpha): max(0, x) + min(0, alpha*(exp(x/alpha)-1))
    return jnp.where(v > 0, v, alpha * (jnp.exp(jnp.minimum(v, 0.0) / alpha) - 1.0))


def mlp_sum_kernel(x_ref, apx_ref, w0a, w0x, b0, w1, b1, w2, b2, w3t, b3c, o_ref):
    rows = x_ref.shape[0]           # = mols_per_block * atoms
    mols = o_ref.shape[1]
    atoms = rows // mols

    x = x_ref[...]                                                     # (rows, 1280) bf16
    # layer 0: 1280-wide bf16 MXU matmul (f32 accumulation) + rank-1 approx update (VPU)
    h = jnp.dot(x, w0a[...], preferred_element_type=jnp.float32)       # (rows, 64) f32
    h = _celu(h + apx_ref[...] * w0x[...] + b0[...])
    h = _celu(jnp.dot(h, w1[...], preferred_element_type=jnp.float32) + b1[...])
    h = _celu(jnp.dot(h, w2[...], preferred_element_type=jnp.float32) + b2[...])  # (rows,16)

    # fold the atom sum before the final Linear:  sum_i (h_i @ W3 + b3) = (sum_i h_i) @ W3 + A*b3
    s = jnp.sum(h.reshape(mols, atoms, h.shape[-1]), axis=1)           # (mols, 16)
    # contract last dims of both operands -> lane-dense (C, mols) result
    y = lax.dot_general(w3t[...], s, (((1,), (1,)), ((), ())),
                        preferred_element_type=jnp.float32)            # (C, mols)
    o_ref[...] = y + float(atoms) * b3c[...]


def mlp_sum_forward(aev, approx, params, mols_per_block=128):
    """aev: (N, A, 1280) f32; approx: (N, A) f32; params: [(W (in,out), b (1,out))]*4.

    Returns (N, C) f32. Molecules are processed mols_per_block at a time; the MXU
    sees (mols_per_block*A, 1280) row blocks and the output is stored lane-dense.
    """
    N, A, D = aev.shape
    assert D == AEV_DIM
    C = params[-1][0].shape[1]

    mols = int(min(mols_per_block, N))
    n_blocks = pl.cdiv(N, mols)
    n_pad = n_blocks * mols
    if n_pad != N:
        # zero-pad the tail block; padded molecules are sliced off below
        aev = jnp.pad(aev, ((0, n_pad - N), (0, 0), (0, 0)))
        approx = jnp.pad(approx, ((0, n_pad - N), (0, 0)))

    rows = mols * A
    x = aev.reshape(n_pad * A, D).astype(jnp.bfloat16)          # halve dominant HBM read
    apx = approx.reshape(n_pad * A, 1).astype(jnp.float32)

    (w0, b0), (w1, b1), (w2, b2), (w3, b3) = params
    w0a = w0[:AEV_DIM].astype(jnp.bfloat16)                     # (1280, 64) bf16 MXU weights
    w0x = w0[AEV_DIM:]                                          # (1, 64)  approx-channel row
    w3t = w3.T                                                  # (C, 16)
    b3c = b3.T                                                  # (C, 1)
    weights = [w0a, w0x, b0, w1, b1, w2, b2, w3t, b3c]

    in_specs = [
        pl.BlockSpec((rows, D), lambda n: (n, 0)),              # (mols*A, 1280) bf16 block
        pl.BlockSpec((rows, 1), lambda n: (n, 0)),              # approx column block
    ]
    in_specs += [pl.BlockSpec(t.shape, lambda n: (0, 0)) for t in weights]

    out = pl.pallas_call(
        mlp_sum_kernel,
        out_shape=jax.ShapeDtypeStruct((C, n_pad), jnp.float32),
        grid_spec=pltpu.PrefetchScalarGridSpec(
            num_scalar_prefetch=0,
            grid=(n_blocks,),
            in_specs=in_specs,
            out_specs=pl.BlockSpec((C, mols), lambda n: (0, n)),  # lane-dense output tile
        ),
        compiler_params=pltpu.CompilerParams(
            dimension_semantics=("parallel",)),
    )(x, apx, *weights)

    return out[:, :N].T                                         # (N, C)


# ----------------------------------------------------------------------------
# Parameter init (xavier-normal weights, zero biases, deterministic)
# ----------------------------------------------------------------------------
def init_params(key):
    dims = [IN_DIM] + HIDDEN_CHANNELS + [OUTPUT_CHANNELS]
    params = []
    for i in range(len(dims) - 1):
        key, sub = jax.random.split(key)
        fan_in, fan_out = dims[i], dims[i + 1]
        std = float(np.sqrt(2.0 / (fan_in + fan_out)))
        w = std * jax.random.normal(sub, (fan_in, fan_out), dtype=jnp.float32)
        b = jnp.zeros((1, fan_out), dtype=jnp.float32)
        params.append((w, b))
    return params


# ----------------------------------------------------------------------------
# CouplingNNP forward (dimer_aev=True, use_belonging=True, modified_aev=False)
# ----------------------------------------------------------------------------
def coupling_nnp_forward(params, species, coordinates, belongings, approx=None):
    # species_with_belonging = species + (belongings - 1) * num_elements
    species_wb = species + (belongings - 1) * NUM_ELEMENTS
    aev = compute_aev(species_wb, coordinates)                  # (N, A, 1280) f32
    if approx is None:
        approx = jnp.zeros(species.shape, dtype=jnp.float32)
    if approx.ndim == 3:
        approx = approx[..., 0]                                 # approx_channels = 1
    return mlp_sum_forward(aev, approx.astype(jnp.float32), params)


# ----------------------------------------------------------------------------
# NumPy reference (f32 math; bf16-quantizes the AEV matmul inputs to match the kernel)
# ----------------------------------------------------------------------------
def reference_forward(params, aev, approx):
    def q_bf16(t):
        return np.asarray(jnp.asarray(t).astype(jnp.bfloat16).astype(jnp.float32))

    def celu(v, alpha=0.1):
        return np.where(v > 0, v, alpha * (np.exp(np.minimum(v, 0.0) / alpha) - 1.0))

    N, A, D = aev.shape
    (w0, b0), (w1, b1), (w2, b2), (w3, b3) = [
        (np.asarray(w, np.float32), np.asarray(b, np.float32)) for w, b in params]
    x = np.concatenate([q_bf16(aev), np.asarray(approx, np.float32)[..., None]], axis=-1)
    w0 = np.concatenate([q_bf16(w0[:D]), w0[D:]], axis=0)
    h = x.reshape(N * A, -1)
    h = celu(h @ w0 + b0)
    h = celu(h @ w1 + b1)
    h = celu(h @ w2 + b2)
    y = h @ w3 + b3                                             # per-atom outputs
    return y.reshape(N, A, -1).sum(axis=1)                      # sum over atoms -> (N, C)


if __name__ == "__main__":
    key = jax.random.PRNGKey(0)
    kc, ks, ka, kw = jax.random.split(key, 4)
    params = init_params(kw)
    fwd = jax.jit(coupling_nnp_forward)

    # ---- small case (N=2 molecules, A=8 atoms): single grid block ----
    N, A = 2, 8
    coordinates = jax.random.uniform(kc, (N, A, 3), minval=0.0, maxval=4.0,
                                     dtype=jnp.float32)
    species = jax.random.randint(ks, (N, A), 0, NUM_ELEMENTS, dtype=jnp.int32)
    belongings = jnp.concatenate(
        [jnp.ones((N, A // 2), jnp.int32), 2 * jnp.ones((N, A - A // 2), jnp.int32)],
        axis=1)
    approx = jax.random.normal(ka, (N, A), dtype=jnp.float32)

    out = jax.block_until_ready(fwd(params, species, coordinates, belongings, approx))
    assert out.shape == (N, OUTPUT_CHANNELS)
    aev = compute_aev(species + (belongings - 1) * NUM_ELEMENTS, coordinates)
    ref = reference_forward(params, np.asarray(aev), np.asarray(approx))
    np.testing.assert_allclose(np.asarray(out), ref, rtol=2e-3, atol=2e-3)

    # ---- larger case (N=130): exercises multi-block grid, tail padding, lane-dense stores ----
    N2, A2 = 130, 8
    k1, k2, k3 = jax.random.split(ka, 3)
    coords2 = jax.random.uniform(k1, (N2, A2, 3), minval=0.0, maxval=4.0,
                                 dtype=jnp.float32)
    species2 = jax.random.randint(k2, (N2, A2), 0, NUM_ELEMENTS, dtype=jnp.int32)
    belong2 = jnp.concatenate(
        [jnp.ones((N2, A2 // 2), jnp.int32), 2 * jnp.ones((N2, A2 - A2 // 2), jnp.int32)],
        axis=1)
    approx2 = jax.random.normal(k3, (N2, A2), dtype=jnp.float32)

    out2 = jax.block_until_ready(fwd(params, species2, coords2, belong2, approx2))
    assert out2.shape == (N2, OUTPUT_CHANNELS)
    aev2 = compute_aev(species2 + (belong2 - 1) * NUM_ELEMENTS, coords2)
    ref2 = reference_forward(params, np.asarray(aev2), np.asarray(approx2))
    np.testing.assert_allclose(np.asarray(out2), ref2, rtol=2e-3, atol=2e-3)

    print("KERNEL_OK")
</pallas_src>

<mosaic_0001>
module attributes {stable_mosaic.version = 11 : i64} {
  func.func @mlp_sum_kernel(%arg0: i32, %arg1: memref<16x1280xbf16, #tpu.memory_space<vmem>>, %arg2: memref<16x1xf32, #tpu.memory_space<vmem>>, %arg3: memref<1280x64xbf16, #tpu.memory_space<vmem>>, %arg4: memref<1x64xf32, #tpu.memory_space<vmem>>, %arg5: memref<1x64xf32, #tpu.memory_space<vmem>>, %arg6: memref<64x32xf32, #tpu.memory_space<vmem>>, %arg7: memref<1x32xf32, #tpu.memory_space<vmem>>, %arg8: memref<32x16xf32, #tpu.memory_space<vmem>>, %arg9: memref<1x16xf32, #tpu.memory_space<vmem>>, %arg10: memref<1x16xf32, #tpu.memory_space<vmem>>, %arg11: memref<1x1xf32, #tpu.memory_space<vmem>>, %arg12: memref<1x2xf32, #tpu.memory_space<vmem>>) attributes {dimension_semantics = [#tpu.dimension_semantics<parallel>], iteration_bounds = array<i64: 1>, scalar_prefetch = 0 : i64, scratch_operands = 0 : i64, tpu.core_type = #tpu.core_type<tc>, window_params = [{transform_indices = @transform_0, window_bounds = array<i64: 16, 1280>}, {transform_indices = @transform_1, window_bounds = array<i64: 16, 1>}, {pipeline_mode = #tpu.pipeline_mode<synchronous>, transform_indices = @transform_2, window_bounds = array<i64: 1280, 64>}, {pipeline_mode = #tpu.pipeline_mode<synchronous>, transform_indices = @transform_3, window_bounds = array<i64: 1, 64>}, {pipeline_mode = #tpu.pipeline_mode<synchronous>, transform_indices = @transform_4, window_bounds = array<i64: 1, 64>}, {pipeline_mode = #tpu.pipeline_mode<synchronous>, transform_indices = @transform_5, window_bounds = array<i64: 64, 32>}, {pipeline_mode = #tpu.pipeline_mode<synchronous>, transform_indices = @transform_6, window_bounds = array<i64: 1, 32>}, {pipeline_mode = #tpu.pipeline_mode<synchronous>, transform_indices = @transform_7, window_bounds = array<i64: 32, 16>}, {pipeline_mode = #tpu.pipeline_mode<synchronous>, transform_indices = @transform_8, window_bounds = array<i64: 1, 16>}, {pipeline_mode = #tpu.pipeline_mode<synchronous>, transform_indices = @transform_9, window_bounds = array<i64: 1, 16>}, {pipeline_mode = #tpu.pipeline_mode<synchronous>, transform_indices = @transform_10, window_bounds = array<i64: 1, 1>}, {transform_indices = @transform_11, window_bounds = array<i64: 1, 2>}]} {
    %c0 = arith.constant 0 : index
    %c0_0 = arith.constant 0 : index
    %0 = vector.load %arg1[%c0, %c0_0] : memref<16x1280xbf16, #tpu.memory_space<vmem>>, vector<16x1280xbf16>
    %c0_1 = arith.constant 0 : index
    %c0_2 = arith.constant 0 : index
    %1 = vector.load %arg3[%c0_1, %c0_2] : memref<1280x64xbf16, #tpu.memory_space<vmem>>, vector<1280x64xbf16>
    %cst = arith.constant dense<0.000000e+00> : vector<16x64xf32>
    %2 = tpu.matmul %0, %1, %cst {dimension_numbers = #tpu.dot_dimension_numbers<[1], [0], [0], [1], [0, 0, 1, 1], [], []>} : vector<16x1280xbf16>, vector<1280x64xbf16>, vector<16x64xf32> -> vector<16x64xf32>
    %c0_3 = arith.constant 0 : index
    %c0_4 = arith.constant 0 : index
    %3 = vector.load %arg2[%c0_3, %c0_4] : memref<16x1xf32, #tpu.memory_space<vmem>>, vector<16x1xf32>
    %c0_5 = arith.constant 0 : index
    %c0_6 = arith.constant 0 : index
    %4 = vector.load %arg4[%c0_5, %c0_6] : memref<1x64xf32, #tpu.memory_space<vmem>>, vector<1x64xf32>
    %5 = vector.broadcast %3 : vector<16x1xf32> to vector<16x64xf32>
    %6 = vector.broadcast %4 : vector<1x64xf32> to vector<16x64xf32>
    %7 = arith.mulf %5, %6 : vector<16x64xf32>
    %8 = arith.addf %2, %7 : vector<16x64xf32>
    %c0_7 = arith.constant 0 : index
    %c0_8 = arith.constant 0 : index
    %9 = vector.load %arg5[%c0_7, %c0_8] : memref<1x64xf32, #tpu.memory_space<vmem>>, vector<1x64xf32>
    %10 = vector.broadcast %9 : vector<1x64xf32> to vector<16x64xf32>
    %11 = arith.addf %8, %10 : vector<16x64xf32>
    %cst_9 = arith.constant 0.000000e+00 : f32
    %12 = vector.broadcast %cst_9 : f32 to vector<16x64xf32>
    %13 = arith.cmpf ogt, %11, %12 : vector<16x64xf32>
    %cst_10 = arith.constant 0.000000e+00 : f32
    %14 = vector.broadcast %cst_10 : f32 to vector<16x64xf32>
    %15 = arith.minimumf %11, %14 : vector<16x64xf32>
    %cst_11 = arith.constant 1.000000e-01 : f32
    %16 = vector.broadcast %cst_11 : f32 to vector<16x64xf32>
    %17 = arith.divf %15, %16 : vector<16x64xf32>
    %18 = math.exp %17 : vector<16x64xf32>
    %cst_12 = arith.constant 1.000000e+00 : f32
    %19 = vector.broadcast %cst_12 : f32 to vector<16x64xf32>
    %20 = arith.subf %18, %19 : vector<16x64xf32>
    %cst_13 = arith.constant 1.000000e-01 : f32
    %21 = vector.broadcast %cst_13 : f32 to vector<16x64xf32>
    %22 = arith.mulf %21, %20 : vector<16x64xf32>
    %23 = arith.select %13, %11, %22 : vector<16x64xi1>, vector<16x64xf32>
    %c0_14 = arith.constant 0 : index
    %c0_15 = arith.constant 0 : index
    %24 = vector.load %arg6[%c0_14, %c0_15] : memref<64x32xf32, #tpu.memory_space<vmem>>, vector<64x32xf32>
    %cst_16 = arith.constant dense<0.000000e+00> : vector<16x32xf32>
    %25 = tpu.matmul %23, %24, %cst_16 {dimension_numbers = #tpu.dot_dimension_numbers<[1], [0], [0], [1], [0, 0, 1, 1], [], []>} : vector<16x64xf32>, vector<64x32xf32>, vector<16x32xf32> -> vector<16x32xf32>
    %c0_17 = arith.constant 0 : index
    %c0_18 = arith.constant 0 : index
    %26 = vector.load %arg7[%c0_17, %c0_18] : memref<1x32xf32, #tpu.memory_space<vmem>>, vector<1x32xf32>
    %27 = vector.broadcast %26 : vector<1x32xf32> to vector<16x32xf32>
    %28 = arith.addf %25, %27 : vector<16x32xf32>
    %cst_19 = arith.constant 0.000000e+00 : f32
    %29 = vector.broadcast %cst_19 : f32 to vector<16x32xf32>
    %30 = arith.cmpf ogt, %28, %29 : vector<16x32xf32>
    %cst_20 = arith.constant 0.000000e+00 : f32
    %31 = vector.broadcast %cst_20 : f32 to vector<16x32xf32>
    %32 = arith.minimumf %28, %31 : vector<16x32xf32>
    %cst_21 = arith.constant 1.000000e-01 : f32
    %33 = vector.broadcast %cst_21 : f32 to vector<16x32xf32>
    %34 = arith.divf %32, %33 : vector<16x32xf32>
    %35 = math.exp %34 : vector<16x32xf32>
    %cst_22 = arith.constant 1.000000e+00 : f32
    %36 = vector.broadcast %cst_22 : f32 to vector<16x32xf32>
    %37 = arith.subf %35, %36 : vector<16x32xf32>
    %cst_23 = arith.constant 1.000000e-01 : f32
    %38 = vector.broadcast %cst_23 : f32 to vector<16x32xf32>
    %39 = arith.mulf %38, %37 : vector<16x32xf32>
    %40 = arith.select %30, %28, %39 : vector<16x32xi1>, vector<16x32xf32>
    %c0_24 = arith.constant 0 : index
    %c0_25 = arith.constant 0 : index
    %41 = vector.load %arg8[%c0_24, %c0_25] : memref<32x16xf32, #tpu.memory_space<vmem>>, vector<32x16xf32>
    %cst_26 = arith.constant dense<0.000000e+00> : vector<16x16xf32>
    %42 = tpu.matmul %40, %41, %cst_26 {dimension_numbers = #tpu.dot_dimension_numbers<[1], [0], [0], [1], [0, 0, 1, 1], [], []>} : vector<16x32xf32>, vector<32x16xf32>, vector<16x16xf32> -> vector<16x16xf32>
    %c0_27 = arith.constant 0 : index
    %c0_28 = arith.constant 0 : index
    %43 = vector.load %arg9[%c0_27, %c0_28] : memref<1x16xf32, #tpu.memory_space<vmem>>, vector<1x16xf32>
    %44 = vector.broadcast %43 : vector<1x16xf32> to vector<16x16xf32>
    %45 = arith.addf %42, %44 : vector<16x16xf32>
    %cst_29 = arith.constant 0.000000e+00 : f32
    %46 = vector.broadcast %cst_29 : f32 to vector<16x16xf32>
    %47 = arith.cmpf ogt, %45, %46 : vector<16x16xf32>
    %cst_30 = arith.constant 0.000000e+00 : f32
    %48 = vector.broadcast %cst_30 : f32 to vector<16x16xf32>
    %49 = arith.minimumf %45, %48 : vector<16x16xf32>
    %cst_31 = arith.constant 1.000000e-01 : f32
    %50 = vector.broadcast %cst_31 : f32 to vector<16x16xf32>
    %51 = arith.divf %49, %50 : vector<16x16xf32>
    %52 = math.exp %51 : vector<16x16xf32>
    %cst_32 = arith.constant 1.000000e+00 : f32
    %53 = vector.broadcast %cst_32 : f32 to vector<16x16xf32>
    %54 = arith.subf %52, %53 : vector<16x16xf32>
    %cst_33 = arith.constant 1.000000e-01 : f32
    %55 = vector.broadcast %cst_33 : f32 to vector<16x16xf32>
    %56 = arith.mulf %55, %54 : vector<16x16xf32>
    %57 = arith.select %47, %45, %56 : vector<16x16xi1>, vector<16x16xf32>
    %58 = vector.shape_cast %57 : vector<16x16xf32> to vector<2x8x16xf32>
    %cst_34 = arith.constant dense<0.000000e+00> : vector<2x16xf32>
    %59 = vector.multi_reduction <add>, %58, %cst_34 [1] : vector<2x8x16xf32> to vector<2x16xf32>
    %c0_35 = arith.constant 0 : index
    %c0_36 = arith.constant 0 : index
    %60 = vector.load %arg10[%c0_35, %c0_36] : memref<1x16xf32, #tpu.memory_space<vmem>>, vector<1x16xf32>
    %cst_37 = arith.constant dense<0.000000e+00> : vector<1x2xf32>
    %61 = tpu.matmul %60, %59, %cst_37 {dimension_numbers = #tpu.dot_dimension_numbers<[1], [1], [0], [0], [0, 0, 1, 0], [], []>} : vector<1x16xf32>, vector<2x16xf32>, vector<1x2xf32> -> vector<1x2xf32>
    %c0_38 = arith.constant 0 : index
    %c0_39 = arith.constant 0 : index
    %62 = vector.load %arg11[%c0_38, %c0_39] : memref<1x1xf32, #tpu.memory_space<vmem>>, vector<1x1xf32>
    %cst_40 = arith.constant 8.000000e+00 : f32
    %63 = vector.broadcast %cst_40 : f32 to vector<1x1xf32>
    %64 = arith.mulf %63, %62 : vector<1x1xf32>
    %65 = vector.broadcast %64 : vector<1x1xf32> to vector<1x2xf32>
    %66 = arith.addf %61, %65 : vector<1x2xf32>
    %c0_41 = arith.constant 0 : index
    %c0_42 = arith.constant 0 : index
    %67 = vector.load %arg12[%c0_41, %c0_42] : memref<1x2xf32, #tpu.memory_space<vmem>>, vector<1x2xf32>
    tpu.vector_store %arg12[%c0_41, %c0_42], %66 {strides = array<i32>} : memref<1x2xf32, #tpu.memory_space<vmem>>, vector<1x2xf32>,
    return
  }
  func.func @transform_0(%arg0: i32) -> (i32, i32) {
    %c0_i32 = arith.constant 0 : i32
    %c0_i32_0 = arith.constant 0 : i32
    return %arg0, %c0_i32 : i32, i32
  }
  func.func @transform_1(%arg0: i32) -> (i32, i32) {
    %c0_i32 = arith.constant 0 : i32
    %c0_i32_0 = arith.constant 0 : i32
    return %arg0, %c0_i32 : i32, i32
  }
  func.func @transform_2(%arg0: i32) -> (i32, i32) {
    %c0_i32 = arith.constant 0 : i32
    %c0_i32_0 = arith.constant 0 : i32
    %c0_i32_1 = arith.constant 0 : i32
    return %c0_i32, %c0_i32_0 : i32, i32
  }
  func.func @transform_3(%arg0: i32) -> (i32, i32) {
    %c0_i32 = arith.constant 0 : i32
    %c0_i32_0 = arith.constant 0 : i32
    %c0_i32_1 = arith.constant 0 : i32
    return %c0_i32, %c0_i32_0 : i32, i32
  }
  func.func @transform_4(%arg0: i32) -> (i32, i32) {
    %c0_i32 = arith.constant 0 : i32
    %c0_i32_0 = arith.constant 0 : i32
    %c0_i32_1 = arith.constant 0 : i32
    return %c0_i32, %c0_i32_0 : i32, i32
  }
  func.func @transform_5(%arg0: i32) -> (i32, i32) {
    %c0_i32 = arith.constant 0 : i32
    %c0_i32_0 = arith.constant 0 : i32
    %c0_i32_1 = arith.constant 0 : i32
    return %c0_i32, %c0_i32_0 : i32, i32
  }
  func.func @transform_6(%arg0: i32) -> (i32, i32) {
    %c0_i32 = arith.constant 0 : i32
    %c0_i32_0 = arith.constant 0 : i32
    %c0_i32_1 = arith.constant 0 : i32
    return %c0_i32, %c0_i32_0 : i32, i32
  }
  func.func @transform_7(%arg0: i32) -> (i32, i32) {
    %c0_i32 = arith.constant 0 : i32
    %c0_i32_0 = arith.constant 0 : i32
    %c0_i32_1 = arith.constant 0 : i32
    return %c0_i32, %c0_i32_0 : i32, i32
  }
  func.func @transform_8(%arg0: i32) -> (i32, i32) {
    %c0_i32 = arith.constant 0 : i32
    %c0_i32_0 = arith.constant 0 : i32
    %c0_i32_1 = arith.constant 0 : i32
    return %c0_i32, %c0_i32_0 : i32, i32
  }
  func.func @transform_9(%arg0: i32) -> (i32, i32) {
    %c0_i32 = arith.constant 0 : i32
    %c0_i32_0 = arith.constant 0 : i32
    %c0_i32_1 = arith.constant 0 : i32
    return %c0_i32, %c0_i32_0 : i32, i32
  }
  func.func @transform_10(%arg0: i32) -> (i32, i32) {
    %c0_i32 = arith.constant 0 : i32
    %c0_i32_0 = arith.constant 0 : i32
    %c0_i32_1 = arith.constant 0 : i32
    return %c0_i32, %c0_i32_0 : i32, i32
  }
  func.func @transform_11(%arg0: i32) -> (i32, i32) {
    %c0_i32 = arith.constant 0 : i32
    %c0_i32_0 = arith.constant 0 : i32
    return %c0_i32, %arg0 : i32, i32
  }
}

</mosaic_0001>

<bundles_post_ra>
// kernel: coupling_nnp_forward.1
= control target key start
LH: loop header
LB: loop body
LE: loop exit
PB: predicated region body
PF: predicated region fallthrough
CT: control target
= control target key end

     0   :  { %s2178_s0 = inlined_call_operand.vmem [shape: bf16[16,1280], index: 0, kind: input, shape index: {}]   ;;  %s2179_s1 = inlined_call_operand.vmem [shape: f32[16,1], index: 1, kind: input, shape index: {}]   ;;  %s2180_s2 = inlined_call_operand.vmem [shape: bf16[1280,64], index: 2, kind: input, shape index: {}]   ;;  %s2181_s3 = inlined_call_operand.vmem [shape: f32[1,64], index: 3, kind: input, shape index: {}]   ;;  %s2182_s4 = inlined_call_operand.vmem [shape: f32[1,64], index: 4, kind: input, shape index: {}]   ;;  %s2183_s5 = inlined_call_operand.vmem [shape: f32[64,32], index: 5, kind: input, shape index: {}]   ;;  %s2184_s6 = inlined_call_operand.vmem [shape: f32[1,32], index: 6, kind: input, shape index: {}]   ;;  %s2185_s7 = inlined_call_operand.vmem [shape: f32[32,16], index: 7, kind: input, shape index: {}]   ;;  %s2186_s8 = inlined_call_operand.vmem [shape: f32[1,16], index: 8, kind: input, shape index: {}]   ;;  %s2187_s9 = inlined_call_operand.vmem [shape: f32[1,16], index: 9, kind: input, shape index: {}]   ;;  %s2188_s10 = inlined_call_operand.<no memory space> [shape: f32[1,1], index: 10, kind: input, shape index: {}]   ;;  %s2189_s11 = inlined_call_operand.hbm [shape: f32[1,2], index: 11, kind: output, shape index: {}]  }
   0x1   :  { %v16_v0 = vstv %s2188_s10 }
   0x2   :  { %17 = vst [vmem:[#allocation2] sm:$0x1] %v16_v0 }
   0x3   :  { %v1637_v1 = vld [vmem:[%s2180_s2 + $0x40] sm:$0xff]   ;;  %v1768_v3 = vmov 0   ;;  %v1641_v6 = vld [vmem:[%s2180_s2 + $0x48] sm:$0xff]   ;;  %v1645_v10 = vld [vmem:[%s2180_s2 + $0x50] sm:$0xff]  }
   0x4   :  { %v1638_v2 = vld [vmem:[%s2180_s2] sm:$0xff]   ;;  %1635 = vset.pattern.permute.xlu0 %v1768_v3  ;;  %1636 = vset.pattern.permute.xlu1 %v1768_v3  ;;  %v1642_v7 = vld [vmem:[%s2180_s2 + $0x8] sm:$0xff]   ;;  %v1646_v11 = vld [vmem:[%s2180_s2 + $0x10] sm:$0xff]  }
   0x5   :  { %1444 = vmatprep.subr.bf16.mxu0 %v1637_v1  ;;  %v1639_v4 = vld [vmem:[%s2180_s2 + $0xc0] sm:$0xff]   ;;  %v1643_v8 = vld [vmem:[%s2180_s2 + $0xc8] sm:$0xff]   ;;  %v1647_v12 = vld [vmem:[%s2180_s2 + $0xd0] sm:$0xff]  }
   0x6   :  { %1445 = vmatpush3.bf16.msra.mxu0 %v1638_v2  ;;  %v1640_v5 = vld [vmem:[%s2180_s2 + $0x80] sm:$0xff]   ;;  %1466 = vmatprep.subr.bf16.mxu1 %v1639_v4  ;;  %v1644_v9 = vld [vmem:[%s2180_s2 + $0x88] sm:$0xff]   ;;  %v1648_v13 = vld [vmem:[%s2180_s2 + $0x90] sm:$0xff]  }
   0x7   :  { %1467 = vmatpush3.bf16.msra.mxu1 %v1640_v5  ;;  %1446 = vmatprep.subr.bf16.mxu0 %v1641_v6  ;;  %v1649_v14 = vld [vmem:[%s2180_s2 + $0x58] sm:$0xff]   ;;  %v1653_v18 = vld [vmem:[%s2180_s2 + $0x60] sm:$0xff]   ;;  %v1657_v22 = vld [vmem:[%s2180_s2 + $0x68] sm:$0xff]  }
   0x8   :  { %1468 = vmatprep.subr.bf16.mxu1 %v1643_v8  ;;  %v1650_v15 = vld [vmem:[%s2180_s2 + $0x18] sm:$0xff]   ;;  %v1654_v19 = vld [vmem:[%s2180_s2 + $0x20] sm:$0xff]   ;;  %v1658_v23 = vld [vmem:[%s2180_s2 + $0x28] sm:$0xff]  }
   0x9   :  { %v1651_v16 = vld [vmem:[%s2180_s2 + $0xd8] sm:$0xff]   ;;  %v1655_v20 = vld [vmem:[%s2180_s2 + $0xe0] sm:$0xff]   ;;  %v1659_v24 = vld [vmem:[%s2180_s2 + $0xe8] sm:$0xff]  }
   0xa   :  { %1447 = vmatpush3.bf16.msra.mxu0 %v1642_v7  ;;  %v1652_v17 = vld [vmem:[%s2180_s2 + $0x98] sm:$0xff]   ;;  %v1656_v21 = vld [vmem:[%s2180_s2 + $0xa0] sm:$0xff]   ;;  %v1660_v25 = vld [vmem:[%s2180_s2 + $0xa8] sm:$0xff]  }
   0xb   :  { %1469 = vmatpush3.bf16.msra.mxu1 %v1644_v9  ;;  %1448 = vmatprep.subr.bf16.mxu0 %v1645_v10  ;;  %v1661_v26 = vld [vmem:[%s2180_s2 + $0x70] sm:$0xff]   ;;  %v1665_v30 = vld [vmem:[%s2180_s2 + $0x78] sm:$0xff]   ;;  %v1668_v33 = vld [vmem:[%s2178_s0] ss:$40 sps:$4 sm:$0xff]  }
   0xc   :  { %1470 = vmatprep.subr.bf16.mxu1 %v1647_v12  ;;  %v1662_v27 = vld [vmem:[%s2180_s2 + $0x30] sm:$0xff]   ;;  %v1666_v31 = vld [vmem:[%s2180_s2 + $0x38] sm:$0xff]   ;;  %v1670_v34 = vld [vmem:[%s2178_s0 + $0x4] ss:$40 sps:$4 sm:$0xff]  }
   0xd   :  { %v1663_v28 = vld [vmem:[%s2180_s2 + $0xf0] sm:$0xff]   ;;  %v1667_v32 = vld [vmem:[%s2180_s2 + $0xf8] sm:$0xff]   ;;  %795 = vmatprep.mubr.bf16.mxu0 %v1670_v34  ;;  %v1672_v36 = vld [vmem:[%s2180_s2 + $0x140] sm:$0xff]  }
   0xe   :  { %1449 = vmatpush3.bf16.msra.mxu0 %v1646_v11  ;;  %v1664_v29 = vld [vmem:[%s2180_s2 + $0xb0] sm:$0xff]   ;;  %v1671_v35 = vld [vmem:[%s2180_s2 + $0xb8] sm:$0xff]   ;;  %v1676_v39 = vld [vmem:[%s2180_s2 + $0x100] sm:$0xff]  }
   0xf   :  { %1471 = vmatpush3.bf16.msra.mxu1 %v1648_v13  ;;  %1450 = vmatprep.subr.bf16.mxu0 %v1649_v14  ;;  %v1673_v37 = vld [vmem:[%s2178_s0 + $0x8] ss:$40 sps:$4 sm:$0xff]   ;;  %v1675_v38 = vld [vmem:[%s2178_s0 + $0xc] ss:$40 sps:$4 sm:$0xff]   ;;  %v1677_v40 = vld [vmem:[%s2180_s2 + $0x1c0] sm:$0xff]  }
  0x10   :  { %1472 = vmatprep.subr.bf16.mxu1 %v1651_v16  ;;  %836 = vmatprep.mubr.bf16.mxu1 %v1675_v38  ;;  %v1678_v41 = vld [vmem:[%s2180_s2 + $0x180] sm:$0xff]   ;;  %v1679_v42 = vld [vmem:[%s2180_s2 + $0x148] sm:$0xff]   ;;  %v1683_v46 = vld [vmem:[%s2180_s2 + $0x150] sm:$0xff]  }
  0x11   :  { %v1680_v43 = vld [vmem:[%s2180_s2 + $0x108] sm:$0xff]   ;;  %v1684_v47 = vld [vmem:[%s2180_s2 + $0x110] sm:$0xff]   ;;  %v1687_v50 = vld [vmem:[%s2180_s2 + $0x158] sm:$0xff]  }
  0x12   :  { %1451 = vmatpush3.bf16.msra.mxu0 %v1650_v15  ;;  %v1681_v44 = vld [vmem:[%s2180_s2 + $0x1c8] sm:$0xff]   ;;  %v1685_v48 = vld [vmem:[%s2180_s2 + $0x1d0] sm:$0xff]   ;;  %v1688_v51 = vld [vmem:[%s2180_s2 + $0x118] sm:$0xff]  }
  0x13   :  { %1473 = vmatpush3.bf16.msra.mxu1 %v1652_v17  ;;  %1452 = vmatprep.subr.bf16.mxu0 %v1653_v18  ;;  %v1682_v45 = vld [vmem:[%s2180_s2 + $0x188] sm:$0xff]   ;;  %v1686_v49 = vld [vmem:[%s2180_s2 + $0x190] sm:$0xff]   ;;  %v1689_v52 = vld [vmem:[%s2180_s2 + $0x1d8] sm:$0xff]  }
  0x14   :  { %1474 = vmatprep.subr.bf16.mxu1 %v1655_v20  ;;  %v1690_v53 = vld [vmem:[%s2180_s2 + $0x198] sm:$0xff]   ;;  %v1691_v54 = vld [vmem:[%s2180_s2 + $0x160] sm:$0xff]   ;;  %v1695_v58 = vld [vmem:[%s2180_s2 + $0x168] sm:$0xff]  }
  0x15   :  { %v1692_v55 = vld [vmem:[%s2180_s2 + $0x120] sm:$0xff]   ;;  %v1696_v59 = vld [vmem:[%s2180_s2 + $0x128] sm:$0xff]   ;;  %v1699_v62 = vld [vmem:[%s2180_s2 + $0x170] sm:$0xff]  }
  0x16   :  { %1453 = vmatpush3.bf16.msra.mxu0 %v1654_v19  ;;  %v1693_v56 = vld [vmem:[%s2180_s2 + $0x1e0] sm:$0xff]   ;;  %v1697_v60 = vld [vmem:[%s2180_s2 + $0x1e8] sm:$0xff]   ;;  %v1700_v63 = vld [vmem:[%s2180_s2 + $0x130] sm:$0xff]  }
  0x17   :  { %1475 = vmatpush3.bf16.msra.mxu1 %v1656_v21  ;;  %1454 = vmatprep.subr.bf16.mxu0 %v1657_v22  ;;  %v1694_v57 = vld [vmem:[%s2180_s2 + $0x1a0] sm:$0xff]   ;;  %v1698_v61 = vld [vmem:[%s2180_s2 + $0x1a8] sm:$0xff]   ;;  %v1701_v0 = vld [vmem:[%s2180_s2 + $0x1f0] sm:$0xff]  }
  0x18   :  { %1476 = vmatprep.subr.bf16.mxu1 %v1659_v24  ;;  %v1702_v1 = vld [vmem:[%s2180_s2 + $0x1b0] sm:$0xff]   ;;  %v1703_v2 = vld [vmem:[%s2180_s2 + $0x178] sm:$0xff]   ;;  %v1710_v8 = vld [vmem:[%s2180_s2 + $0x240] sm:$0xff]  }
  0x19   :  { %v1704_v3 = vld [vmem:[%s2180_s2 + $0x138] sm:$0xff]   ;;  %v1714_v11 = vld [vmem:[%s2180_s2 + $0x200] sm:$0xff]   ;;  %v1715_v12 = vld [vmem:[%s2180_s2 + $0x248] sm:$0xff]  }
  0x1a   :  { %1455 = vmatpush3.bf16.msra.mxu0 %v1658_v23  ;;  %v1705_v4 = vld [vmem:[%s2180_s2 + $0x1f8] sm:$0xff]   ;;  %v1716_v13 = vld [vmem:[%s2180_s2 + $0x208] sm:$0xff]   ;;  %v1717_v14 = vld [vmem:[%s2180_s2 + $0x250] sm:$0xff]  }
  0x1b   :  { %1477 = vmatpush3.bf16.msra.mxu1 %v1660_v25  ;;  %1456 = vmatprep.subr.bf16.mxu0 %v1661_v26  ;;  %v1706_v5 = vld [vmem:[%s2178_s0 + $0x10] ss:$40 sps:$4 sm:$0xff]   ;;  %v1708_v6 = vld [vmem:[%s2178_s0 + $0x14] ss:$40 sps:$4 sm:$0xff]   ;;  %v1721_v18 = vld [vmem:[%s2180_s2 + $0x260] sm:$0xff]  }
  0x1c   :  { %1478 = vmatprep.subr.bf16.mxu1 %v1663_v28  ;;  %v1709_v7 = vld [vmem:[%s2180_s2 + $0x1b8] sm:$0xff]   ;;  %v1718_v15 = vld [vmem:[%s2180_s2 + $0x210] sm:$0xff]   ;;  %v1722_v19 = vld [vmem:[%s2180_s2 + $0x220] sm:$0xff]  }
  0x1d   :  { %v1711_v9 = vld [vmem:[%s2178_s0 + $0x18] ss:$40 sps:$4 sm:$0xff]   ;;  %v1713_v10 = vld [vmem:[%s2178_s0 + $0x1c] ss:$40 sps:$4 sm:$0xff]   ;;  %v1723_v20 = vld [vmem:[%s2180_s2 + $0x268] sm:$0xff]  }
  0x1e   :  { %1457 = vmatpush3.bf16.msra.mxu0 %v1662_v27  ;;  %v1719_v16 = vld [vmem:[%s2180_s2 + $0x258] sm:$0xff]   ;;  %v1731_v21 = vld [vmem:[%s2178_s0 + $0x24] ss:$40 sps:$4 sm:$0xff]  }
  0x1f   :  { %1479 = vmatpush3.bf16.msra.mxu1 %v1664_v29  ;;  %1458 = vmatprep.subr.bf16.mxu0 %v1665_v30  ;;  %v1720_v17 = vld [vmem:[%s2180_s2 + $0x218] sm:$0xff]   ;;  %v212_v22 = vld [vmem:[%s2179_s1] sm:$0xff] }
  0x20   :  { %1480 = vmatprep.subr.bf16.mxu1 %v1667_v32  ;;  %217 = vperm.xlu0 %1635, %v212_v22  }
  0x22   :  { %1459 = vmatpush3.bf16.msra.mxu0 %v1666_v31 }
  0x23   :  { %1481 = vmatpush3.bf16.msra.mxu1 %v1671_v35  ;;  %1488 = vmatprep.subr.bf16.mxu0 %v1672_v36 }
  0x24   :  { %1510 = vmatprep.subr.bf16.mxu1 %v1677_v40 }
  0x25   :  { %796 = vmatmul.mubr.bf16.vlgmr.msra.gmra.mrb[0].mxu0 %v1668_v33 }
  0x26   :  { %1489 = vmatpush3.bf16.msra.mxu0 %v1676_v39  ;;  %837 = vmatmul.mubr.bf16.vlgmr.msra.gmra.mrb[0].mxu1 %v1673_v37 }
  0x27   :  { %1511 = vmatpush3.bf16.msra.mxu1 %v1678_v41  ;;  %1490 = vmatprep.subr.bf16.mxu0 %v1679_v42 }
  0x28   :  { %1512 = vmatprep.subr.bf16.mxu1 %v1681_v44  ;;  %877 = vmatprep.mubr.bf16.mxu0 %v1708_v6 }
  0x29   :  { %918 = vmatprep.mubr.bf16.mxu1 %v1713_v10 }
  0x2a   :  { %1491 = vmatpush3.bf16.msra.mxu0 %v1680_v43 }
  0x2b   :  { %1513 = vmatpush3.bf16.msra.mxu1 %v1682_v45  ;;  %1492 = vmatprep.subr.bf16.mxu0 %v1683_v46 }
  0x2c   :  { %1514 = vmatprep.subr.bf16.mxu1 %v1685_v48 }
  0x2e   :  { %1493 = vmatpush3.bf16.msra.mxu0 %v1684_v47 }
  0x2f   :  { %1515 = vmatpush3.bf16.msra.mxu1 %v1686_v49  ;;  %1494 = vmatprep.subr.bf16.mxu0 %v1687_v50 }
  0x30   :  { %1516 = vmatprep.subr.bf16.mxu1 %v1689_v52 }
  0x32   :  { %1495 = vmatpush3.bf16.msra.mxu0 %v1688_v51 }
  0x33   :  { %1517 = vmatpush3.bf16.msra.mxu1 %v1690_v53  ;;  %1496 = vmatprep.subr.bf16.mxu0 %v1691_v54 }
  0x34   :  { %1518 = vmatprep.subr.bf16.mxu1 %v1693_v56 }
  0x36   :  { %1497 = vmatpush3.bf16.msra.mxu0 %v1692_v55 }
  0x37   :  { %1519 = vmatpush3.bf16.msra.mxu1 %v1694_v57  ;;  %1498 = vmatprep.subr.bf16.mxu0 %v1695_v58 }
  0x38   :  { %1520 = vmatprep.subr.bf16.mxu1 %v1697_v60 }
  0x3a   :  { %1499 = vmatpush3.bf16.msra.mxu0 %v1696_v59 }
  0x3b   :  { %1521 = vmatpush3.bf16.msra.mxu1 %v1698_v61  ;;  %1500 = vmatprep.subr.bf16.mxu0 %v1699_v62 }
  0x3c   :  { %1522 = vmatprep.subr.bf16.mxu1 %v1701_v0 }
  0x3e   :  { %1501 = vmatpush3.bf16.msra.mxu0 %v1700_v63 }
  0x3f   :  { %1523 = vmatpush3.bf16.msra.mxu1 %v1702_v1  ;;  %1502 = vmatprep.subr.bf16.mxu0 %v1703_v2 }
  0x40   :  { %1524 = vmatprep.subr.bf16.mxu1 %v1705_v4 }
  0x42   :  { %1503 = vmatpush3.bf16.msra.mxu0 %v1704_v3 }
  0x43   :  { %1525 = vmatpush3.bf16.msra.mxu1 %v1709_v7  ;;  %1532 = vmatprep.subr.bf16.mxu0 %v1710_v8 }
  0x45   :  { %878 = vmatmul.mubr.bf16.vlgmr.msra.gmra.mrb[4].mxu0 %v1706_v5 }
  0x46   :  { %1533 = vmatpush3.bf16.msra.mxu0 %v1714_v11  ;;  %919 = vmatmul.mubr.bf16.vlgmr.msra.gmra.mrb[4].mxu1 %v1711_v9 }
  0x47   :  { %1534 = vmatprep.subr.bf16.mxu0 %v1715_v12 }
  0x4a   :  { %1535 = vmatpush3.bf16.msra.mxu0 %v1716_v13 }
  0x4b   :  { %1536 = vmatprep.subr.bf16.mxu0 %v1717_v14 }
  0x4e   :  { %1537 = vmatpush3.bf16.msra.mxu0 %v1718_v15 }
  0x4f   :  { %1538 = vmatprep.subr.bf16.mxu0 %v1719_v16 }
  0x52   :  { %1539 = vmatpush3.bf16.msra.mxu0 %v1720_v17 }
  0x53   :  { %1540 = vmatprep.subr.bf16.mxu0 %v1721_v18 }
  0x54   :  { %18 = vsyncpa [#allocation4], 0  ;;  %959 = vmatprep.mubr.bf16.mxu0 %v1731_v21  ;;  %v213_v23 = vld [vmem:[%s2179_s1 + $0x8] sm:$0xff]  ;;  %v1725_v25 = vld [vmem:[%s2180_s2 + $0x270] sm:$0xff]   ;;  %vm1009_vm0 = vcmask 523264   ;;  %vm1118_vm3 = vcmask 261120  }
  0x55   :  { %v1724_v24 = vld [vmem:[%s2180_s2 + $0x228] sm:$0xff]   ;;  %222 = vperm.xlu0 %1635, %v213_v23   ;;  %v1726_v26 = vld [vmem:[%s2180_s2 + $0x230] sm:$0xff]   ;;  %v1727_v27 = vld [vmem:[%s2180_s2 + $0x278] sm:$0xff]   ;;  %vm1770_vm6 = vmmov 0   ;;  %vm1216_vm7 = vcmask 130048   ;;  %vm1245_vm10 = vcmask 1041409  }
  0x56   :  { %1541 = vmatpush3.bf16.msra.mxu0 %v1722_v19  ;;  %v1728_v28 = vld [vmem:[%s2180_s2 + $0x238] sm:$0xff]   ;;  %v1729_v29 = vld [vmem:[%s2178_s0 + $0x20] ss:$40 sps:$4 sm:$0xff]   ;;  %v996_v33 = vld [vmem:[%s2183_s5 + $0x10] sm:$0xff]  ;;  %s1771_s26 = smov [#allocation3]   ;;  %vm1322_vm11 = vcmask 8192  }
  0x57   :  { %1542 = vmatprep.subr.bf16.mxu0 %v1723_v20  ;;  %v994_v30 = vld [vmem:[%s2183_s5] sm:$0xff]  ;;  %v995_v31 = vld [vmem:[%s2183_s5 + $0x8] sm:$0xff]  ;;  %v997_v34 = vld [vmem:[%s2183_s5 + $0x18] sm:$0xff]  ;;  %s1330_s2 = sshll.u32 %s1771_s26, 4  ;;  %s1331_s2 = int_to_ptr.vmem [resolvable:$true] %s1330_s2 }
  0x58   :  { %v1607_v32 = vpack.c.bf16 %v995_v31, %v994_v30  ;;  %v998_v35 = vld [vmem:[%s2183_s5 + $0x20] sm:$0xff]  ;;  %v1611_v36 = vpack.c.bf16 %v997_v34, %v996_v33  ;;  %v999_v37 = vld [vmem:[%s2183_s5 + $0x28] sm:$0xff]  ;;  %v1000_v39 = vld [vmem:[%s2183_s5 + $0x30] sm:$0xff]  ;;  %s1744_s27 = scalar_lea.vmem %s1331_s2, 16  ;;  %s1748_s0 = scalar_lea.vmem %s1331_s2, 32 }
  0x59   :  { %v1615_v38 = vpack.c.bf16 %v999_v37, %v998_v35  ;;  %v1001_v40 = vld [vmem:[%s2183_s5 + $0x38] sm:$0xff]  ;;  %v1338_v43 = vld [vmem:[%s2181_s3] ss:$0 sm:$0xff]  ;;  %p1745_p0 = scmp.ne.s32.totalorder %s1331_s2, %s1744_s27  ;;  %p1749_p1 = scmp.lt.s32.totalorder %s1331_s2, %s1331_s2 }
  0x5a   :  { %1543 = vmatpush3.bf16.msra.mxu0 %v1724_v24  ;;  %1608 = vmatprep.subr.bf16.mxu1 %v1607_v32  ;;  %v1619_v41 = vpack.c.bf16 %v1001_v40, %v1000_v39  ;;  %v1429_v19 = vld [vmem:[%s2182_s4] ss:$0 sm:$0xff]  ;;  %p1750_p2 = scmp.lt.s32.totalorder %s1748_s0, %s1744_s27 }
  0x5b   :  { %1544 = vmatprep.subr.bf16.mxu0 %v1725_v25  ;;  %1610 = vmatpush3.bf16.msra.mxu1 %v1607_v32  ;;  %v1107_v40 = vld [vmem:[%s2185_s7] sm:$0xff] }
  0x5c   :  { %1612 = vmatprep.subr.bf16.mxu1 %v1611_v36  ;;  %p1751_p3 = por %p1750_p2, %p1749_p1 }
  0x5e   :  { %1545 = vmatpush3.bf16.msra.mxu0 %v1726_v26  ;;  %p1752_p4 = pnand %p1751_p3, %p1745_p0 }
  0x5f   :  { %1546 = vmatprep.subr.bf16.mxu0 %v1727_v27  ;;  %1614 = vmatpush3.bf16.msra.mxu1 %v1611_v36 }
  0x60   :  { %1616 = vmatprep.subr.bf16.mxu1 %v1615_v38 }
  0x62   :  { %1547 = vmatpush3.bf16.msra.mxu0 %v1728_v28 }
  0x63   :  { %1618 = vmatpush3.bf16.msra.mxu1 %v1615_v38 }
  0x64   :  { %1620 = vmatprep.subr.bf16.mxu1 %v1619_v41 }
  0x65   :  { %960 = vmatmul.mubr.bf16.vlgmr.msra.gmra.mrb[8].mxu0 %v1729_v29 }
  0x67   :  { %1622 = vmatpush3.bf16.msra.mxu1 %v1619_v41  ;;  %v1108_v41 = vld [vmem:[%s2185_s7 + $0x8] sm:$0xff] }
  0x9f   :  { %v218_v42 = vpop.permute.xlu0 %217 }
  0xa0   :  { %v231_v45 = vmul.f32 %v1338_v43, %v218_v42  ;;  %v1623_v42 = vpack.c.bf16 %v1108_v41, %v1107_v40 }
  0xa2   :  { %1624 = vmatprep.subr.bf16.mxu1 %v1623_v42 }
  0xd4   :  { %v223_v44 = vpop.permute.xlu0 %222 }
  0xd5   :  { %v232_v50 = vmul.f32 %v1338_v43, %v223_v44  ;;  %v1109_v43 = vld [vmem:[%s2185_s7 + $0x10] sm:$0xff]  ;;  %v1110_v44 = vld [vmem:[%s2185_s7 + $0x18] sm:$0xff] }
  0xf8   :  { %v1460_v46 = vpop.f32.mrb[0].mxu0 }
  0xf9   :  { %v1461_v47 = vpop.f32.mrb[1].mxu0  ;;  %v1482_v51 = vpop.f32.mrb[0].mxu1 }
  0xfa   :  { %v1462_v48 = vadd.f32 %v1461_v47, %v1460_v46  ;;  %v1463_v49 = vpop.f32.mrb[2].mxu0  ;;  %v1483_v55 = vpop.f32.mrb[1].mxu1  ;;  %v1432_v46 = vld [vmem:[%s2184_s6] ss:$0 sm:$0xff] }
  0xfb   :  { %v1464_v52 = vpop.f32.mrb[3].mxu0  ;;  %v1484_v56 = vadd.f32 %v1483_v55, %v1482_v51  ;;  %v1485_v57 = vpop.f32.mrb[2].mxu1 }
  0xfc   :  { %v798_v53 = vadd.f32 %v1462_v48, %v231_v45  ;;  %v1465_v54 = vadd.f32 %v1464_v52, %v1463_v49  ;;  %v1486_v59 = vpop.f32.mrb[3].mxu1  ;;  %v1627_v45 = vpack.c.bf16 %v1110_v44, %v1109_v43 }
  0xfd   :  { %v1487_v61 = vadd.f32 %v1486_v59, %v1485_v57 }
  0xfe   :  { %v801_v58 = vadd.f32 %v1465_v54, %v232_v50  ;;  %v839_v60 = vadd.f32 %v1484_v56, %v798_v53 }
 0x100   :  { %v842_v62 = vadd.f32 %v1487_v61, %v801_v58 }
 0x118   :  { %v1504_v63 = vpop.f32.mrb[4].mxu0 }
 0x119   :  { %v1505_v0 = vpop.f32.mrb[5].mxu0  ;;  %v1526_v5 = vpop.f32.mrb[4].mxu1 }
 0x11a   :  { %v1506_v1 = vadd.f32 %v1505_v0, %v1504_v63  ;;  %v1507_v2 = vpop.f32.mrb[6].mxu0  ;;  %v1527_v7 = vpop.f32.mrb[5].mxu1 }
 0x11b   :  { %v1508_v3 = vpop.f32.mrb[7].mxu0  ;;  %v1528_v9 = vadd.f32 %v1527_v7, %v1526_v5  ;;  %v1529_v10 = vpop.f32.mrb[6].mxu1 }
 0x11c   :  { %v880_v4 = vadd.f32 %v1506_v1, %v839_v60  ;;  %v1509_v6 = vadd.f32 %v1508_v3, %v1507_v2  ;;  %v1530_v11 = vpop.f32.mrb[7].mxu1  ;;  %v1769_v1 = vmov 0.0   ;;  %v1232_v2 = vld [vmem:[#allocation2] sm:$0x1] }
 0x11d   :  { %v1531_v13 = vadd.f32 %v1530_v11, %v1529_v10  ;;  %v1233_v3 = vmul.f32 8.0, %v1232_v2 }
 0x11e   :  { %v883_v8 = vadd.f32 %v1509_v6, %v842_v62  ;;  %v921_v12 = vadd.f32 %v1528_v9, %v880_v4  ;;  %v1437_v4 = vld [vmem:[%s2186_s8] ss:$0 sm:$0xff] }
 0x11f   :  { %1236 = vperm.xlu1 %1636, %v1233_v3  }
 0x120   :  { %v924_v14 = vadd.f32 %v1531_v13, %v883_v8 }
 0x138   :  { %v1548_v15 = vpop.f32.mrb[8].mxu0 }
 0x139   :  { %v1549_v16 = vpop.f32.mrb[9].mxu0 }
 0x13a   :  { %v1550_v17 = vadd.f32 %v1549_v16, %v1548_v15  ;;  %v1551_v18 = vpop.f32.mrb[10].mxu0 }
 0x13b   :  { %v1552_v20 = vpop.f32.mrb[11].mxu0 }
 0x13c   :  { %v962_v21 = vadd.f32 %v1550_v17, %v921_v12  ;;  %v1553_v22 = vadd.f32 %v1552_v20, %v1551_v18 }
 0x13e   :  { %v975_v23 = vadd.f32 %v1429_v19, %v962_v21  ;;  %v965_v24 = vadd.f32 %v1553_v22, %v924_v14 }
 0x140   :  { %v979_v25 = vmin.f32 %v975_v23, 0.0  ;;  %v976_v26 = vadd.f32 %v1429_v19, %v965_v24  ;;  %vm977_vm1 = vcmp.gt.f32.partialorder %v975_v23, 0.0 }
 0x142   :  { %v982_v27 = vmul.f32 10.0, %v979_v25  ;;  %v980_v28 = vmin.f32 %v976_v26, 0.0  ;;  %vm978_vm2 = vcmp.gt.f32.partialorder %v976_v26, 0.0 }
 0x144   :  { %v984_v29 = vmul.f32 1.442695, %v982_v27  ;;  %v983_v30 = vmul.f32 10.0, %v980_v28 }
 0x146   :  { %1732 = vpow2.f32 %v984_v29  ;;  %v986_v31 = vmul.f32 1.442695, %v983_v30 }
 0x148   :  { %1734 = vpow2.f32 %v986_v31 }
 0x150   :  { %v1733_v32 = vpop.eup %1732 }
 0x151   :  { %v1430_v33 = vadd.f32 -1.0, %v1733_v32 }
 0x152   :  { %v1735_v34 = vpop.eup %1734 }
 0x153   :  { %v990_v35 = vmul.f32 0.1, %v1430_v33  ;;  %v1431_v36 = vadd.f32 -1.0, %v1735_v34 }
 0x155   :  { %v992_v37 = vsel %vm977_vm1, %v975_v23, %v990_v35  ;;  %v991_v38 = vmul.f32 0.1, %v1431_v36 }
 0x156   :  { %1588 = vmatprep.mubr.msk.f32.mxu1 %vm1009_vm0, %v992_v37 }
 0x157   :  { %v993_v39 = vsel %vm978_vm2, %v976_v26, %v991_v38  ;;  %v1231_v38 = vld [vmem:[%s2187_s9] sm:$0x1] }
 0x158   :  { %1589 = vmatmul.mubr.msk.f32.vlgmr.msra.gmra.mrb[8].mxu1 %vm1009_vm0, %v993_v39  ;;  %v1239_v39 = vlaneseq }
 0x159   :  { %1626 = vmatpush3.bf16.msra.mxu1 %v1623_v42 }
 0x15a   :  { %1628 = vmatprep.subr.bf16.mxu1 %v1627_v45  ;;  %v1240_v40 = vshrl.u32 %v1239_v39, 7 }
 0x15c   :  { %v1241_v41 = vsub.s32 0, %v1240_v40 }
 0x15d   :  { %1630 = vmatpush3.bf16.msra.mxu1 %v1627_v45 }
 0x15e   :  { %1602 = vmatprep.subr.mxu1 %v1769_v1 }
 0x19e   :  { %v1237_v42 = vpop.permute.xlu1 %1236 }
 0x19f   :  { %v1242_v43 = vrot.slane %v1237_v42, %v1241_v41 }
 0x22b   :  { %v1590_v47 = vpop.f32.mrb[8].mxu1 }
 0x22c   :  { %v1088_v48 = vadd.f32 %v1590_v47, %v1432_v46  ;;  %v1082_v49 = vpop.f32.mrb[9].mxu1 }
 0x22d   :  { %v1083_v50 = vadd.f32 %v1432_v46, %v1082_v49 }
 0x22e   :  { %v1094_v51 = vmin.f32 %v1088_v48, 0.0  ;;  %vm1092_vm5 = vcmp.gt.f32.partialorder %v1088_v48, 0.0 }
 0x22f   :  { %v1093_v52 = vmin.f32 %v1083_v50, 0.0  ;;  %vm1091_vm4 = vcmp.gt.f32.partialorder %v1083_v50, 0.0 }
 0x230   :  { %v1096_v53 = vmul.f32 10.0, %v1094_v51 }
 0x231   :  { %v1095_v54 = vmul.f32 10.0, %v1093_v52 }
 0x232   :  { %v1099_v55 = vmul.f32 1.442695, %v1096_v53 }
 0x233   :  { %v1097_v56 = vmul.f32 1.442695, %v1095_v54 }
 0x234   :  { %1736 = vpow2.f32 %v1099_v55 }
 0x235   :  { %1738 = vpow2.f32 %v1097_v56 }
 0x23e   :  { %v1737_v57 = vpop.eup %1736 }
 0x23f   :  { %v1739_v58 = vpop.eup %1738  ;;  %v1436_v59 = vadd.f32 -1.0, %v1737_v57 }
 0x240   :  { %v1435_v60 = vadd.f32 -1.0, %v1739_v58 }
 0x241   :  { %v1104_v61 = vmul.f32 0.1, %v1436_v59 }
 0x242   :  { %v1103_v62 = vmul.f32 0.1, %v1435_v60 }
 0x243   :  { %v1106_v0 = vsel %vm1092_vm5, %v1088_v48, %v1104_v61 }
 0x244   :  { %v1105_v63 = vsel %vm1091_vm4, %v1083_v50, %v1103_v62 }
 0x245   :  { %1599 = vmatprep.mubr.msk.f32.mxu1 %vm1118_vm3, %v1105_v63 }
 0x246   :  { %1600 = vmatmul.mubr.msk.f32.vlgmr.msra.gmra.mrb[10].mxu1 %vm1118_vm3, %v1106_v0 }
 0x247   :  { %1604 = vmatprep.mubr.msk.f32.mxu1 %vm1770_vm6, %v1769_v1 }
 0x319   :  { %v1601_v5 = vpop.f32.mrb[10].mxu1 }
 0x31a   :  { %v1197_v6 = vadd.f32 %v1601_v5, %v1437_v4  ;;  %v1191_v7 = vpop.f32.mrb[11].mxu1 }
 0x31b   :  { %v1192_v8 = vadd.f32 %v1437_v4, %v1191_v7 }
 0x31c   :  { %v1203_v9 = vmin.f32 %v1197_v6, 0.0  ;;  %vm1201_vm8 = vcmp.gt.f32.partialorder %v1197_v6, 0.0 }
 0x31d   :  { %v1202_v10 = vmin.f32 %v1192_v8, 0.0  ;;  %vm1200_vm9 = vcmp.gt.f32.partialorder %v1192_v8, 0.0 }
 0x31e   :  { %v1205_v11 = vmul.f32 10.0, %v1203_v9 }
 0x31f   :  { %v1204_v12 = vmul.f32 10.0, %v1202_v10 }
 0x320   :  { %v1208_v13 = vmul.f32 1.442695, %v1205_v11 }
 0x321   :  { %v1206_v14 = vmul.f32 1.442695, %v1204_v12 }
 0x322   :  { %1740 = vpow2.f32 %v1208_v13 }
 0x323   :  { %1742 = vpow2.f32 %v1206_v14 }
 0x32c   :  { %v1741_v15 = vpop.eup %1740 }
 0x32d   :  { %v1743_v16 = vpop.eup %1742  ;;  %v1441_v17 = vadd.f32 -1.0, %v1741_v15 }
 0x32e   :  { %v1440_v18 = vadd.f32 -1.0, %v1743_v16 }
 0x32f   :  { %v1213_v19 = vmul.f32 0.1, %v1441_v17 }
 0x330   :  { %v1212_v20 = vmul.f32 0.1, %v1440_v18 }
 0x331   :  { %v1215_v21 = vsel %vm1201_vm8, %v1197_v6, %v1213_v19 }
 0x332   :  { %v1214_v22 = vsel %vm1200_vm9, %v1192_v8, %v1212_v20  ;;  %v1224_v23 = vsel %vm1216_vm7, %v1215_v21, 0.0 }
 0x333   :  { %v1217_v24 = vsel %vm1216_vm7, %v1214_v22, 0.0  ;;  %v1225_v25 = vrot.slane %v1224_v23, 4 }
 0x334   :  { %v1218_v26 = vrot.slane %v1217_v24, 4 }
 0x335   :  { %v1226_v27 = vadd.f32 %v1225_v25, %v1224_v23 }
 0x336   :  { %v1219_v28 = vadd.f32 %v1218_v26, %v1217_v24 }
 0x337   :  { %v1227_v29 = vrot.slane %v1226_v27, 2 }
 0x338   :  { %v1220_v30 = vrot.slane %v1219_v28, 2 }
 0x339   :  { %v1228_v31 = vadd.f32 %v1227_v29, %v1226_v27 }
 0x33a   :  { %v1221_v32 = vadd.f32 %v1220_v30, %v1219_v28 }
 0x33b   :  { %v1229_v33 = vrot.slane %v1228_v31, 1 }
 0x33c   :  { %v1222_v34 = vrot.slane %v1221_v32, 1 }
 0x33d   :  { %v1230_v35 = vadd.f32 %v1229_v33, %v1228_v31 }
 0x33e   :  { %v1223_v36 = vadd.f32 %v1222_v34, %v1221_v32 }
 0x340   :  { %v1246_v37 = vsel %vm1245_vm10, %v1230_v35, %v1223_v36 }
 0x341   :  { %1603 = vmatpush3.xpose.msk.msra.mxu1 %vm1216_vm7, %v1246_v37 }
 0x344   :  { %1605 = vmatmul.mubr.msk.f32.vlgmr.msra.gmra.mrb[12].mxu1 %vm1216_vm7, %v1231_v38 }
 0x417   :  { %v1318_v44 = vpop.f32.mrb[12].mxu1 }
 0x418   :  { %v1319_v45 = vadd.f32 %v1318_v44, %v1242_v43  ;;  %v1606_v46 = vpop.f32.mrb[13].mxu1 }
 0x41a   :  { %1323 = vst.msk [vmem:[#allocation3] sm:$0x1] %vm1322_vm11, %v1319_v45 }
 0x41b   :  { %1755 = shalt.err (!%p1752_p4)
}
 0x41c   :  { %s1756_s29 = scalar_lea.hbm %s2189_s11, 16 }
 0x41d   :  { %p1757_p5 = scmp.ne.s32.totalorder %s2189_s11, %s1756_s29  ;;  %p1760_p6 = scmp.lt.u32.totalorder %s1756_s29, %s2189_s11 }
 0x41f   :  { %p1762_p7 = pnand %p1760_p6, %p1757_p5 }
 0x421   :  { %1765 = shalt.err (!%p1762_p7)
}
 0x422   :  { %1333 = dma.vmem_to_hbm [thread:$0]  %s1331_s2, 16, %s2189_s11, [#allocation4]  }
 0x423   :  { %1766 = dma.done.wait [#allocation4], 16  }
 0x424   :  { %1767 = vsyncadd [#allocation4], 4294967280 }
 0x425   :  { %1337 = vsyncpa [#allocation4], 1 }

</bundles_post_ra>
